<compile_context>
chip_gen: v7x
topology: tpu7x:2x2x1
jax: 0.10.0
libtpu: 0.0.40
codegen_flags: <defaults>
</compile_context>

<pallas_src>
import numpy as np
import jax
import jax.numpy as jnp
from jax import lax
from jax.experimental import pallas as pl
from jax.experimental.pallas import tpu as pltpu


def _round_up(x, m):
    return ((x + m - 1) // m) * m


def gru_kernel(len_ref, gates_ref, whh_ref, bhhn_ref, out_ref, h_ref):
    """One grid step == one chunk of `Tc` GRU time steps for one batch tile.

    len_ref  : (Bt, 1)        int32 VMEM (resident) -- sequence lengths
    gates_ref: (Tc, Bt, 3*Dp) f32   VMEM -- hoisted x@W_ih^T + b_ih (+ b_hh for r,z)
    whh_ref  : (Dp, 3*Dp)     f32   VMEM (resident) -- fused hidden weights, [r|z|n]
    bhhn_ref : (1, Dp)        f32   VMEM (resident) -- b_hn (n-gate hidden bias)
    out_ref  : (Tc, Bt, Dp)   f32   VMEM -- outputs for this chunk (zero where padded)
    h_ref    : (Bt, Dp)       f32   VMEM scratch -- carried hidden state
    """
    chunk = pl.program_id(1)
    tc = gates_ref.shape[0]
    dp = h_ref.shape[-1]

    @pl.when(chunk == 0)
    def _():
        h_ref[...] = jnp.zeros_like(h_ref)

    lengths = len_ref[...]            # (Bt, 1) int32
    bhh_n = bhhn_ref[...]             # (1, Dp)
    t0 = chunk * tc                   # global time offset of this chunk

    def step(t, h):
        g_x = gates_ref[t]            # (Bt, 3*Dp): x W_ih^T + b_ih (+ b_hr/b_hz)
        # Single fused MXU push per step (r|z|n concatenated along the lane dim).
        g_h = jnp.dot(h, whh_ref[...], preferred_element_type=jnp.float32)

        r = jax.nn.sigmoid(g_x[:, 0 * dp:1 * dp] + g_h[:, 0 * dp:1 * dp])
        z = jax.nn.sigmoid(g_x[:, 1 * dp:2 * dp] + g_h[:, 1 * dp:2 * dp])
        n = jnp.tanh(g_x[:, 2 * dp:3 * dp] + r * (g_h[:, 2 * dp:3 * dp] + bhh_n))

        h_cand = n + z * (h - n)                       # == (1-z)*n + z*h

        # pack/pad semantics: freeze h and zero the output once t >= lengths[b].
        m = (t0 + t < lengths).astype(jnp.float32)     # (Bt, 1)
        out_ref[t] = m * h_cand
        return h + m * (h_cand - h)

    h_ref[...] = lax.fori_loop(0, tc, step, h_ref[...], unroll=True)


def gru_packed_pallas(x, masks, lengths, w_ih_t, w_hh_t, b_ih, b_hh,
                      *, time_chunk=8, batch_tile=None):
    """x: (B, T, D) float32, lengths: (B,) int32.  Returns (B, T, D)."""
    del masks  # unused by the reference module's forward as well
    B, T, D = x.shape

    Dp = _round_up(D, 128)
    Bp = _round_up(B, 8)
    Tc = max(1, min(time_chunk, T))
    T_pad = _round_up(T, Tc)
    Bt = batch_tile if batch_tile is not None else Bp
    assert Bt % 8 == 0 and Bp % Bt == 0

    # --- Fused, zero-padded weights (gate order r,z,n; each segment Dp wide). ---
    def pad_gate_mat(w):                         # (3, D, D) -> (Dp, 3*Dp)
        w = jnp.pad(w, ((0, 0), (0, Dp - D), (0, Dp - D)))
        return jnp.concatenate([w[0], w[1], w[2]], axis=1)

    def pad_gate_bias(b):                        # (3, 1, D) -> (1, 3*Dp)
        b = jnp.pad(b, ((0, 0), (0, 0), (0, Dp - D)))
        return jnp.concatenate([b[0], b[1], b[2]], axis=1)

    w_ih_cat = pad_gate_mat(w_ih_t)
    w_hh_cat = pad_gate_mat(w_hh_t)
    b_ih_cat = pad_gate_bias(b_ih)
    b_hh_cat = pad_gate_bias(b_hh)
    b_hh_rz = b_hh_cat.at[:, 2 * Dp:].set(0.0)   # fold b_hr, b_hz into the hoist
    b_hh_n = jnp.pad(b_hh[2], ((0, 0), (0, Dp - D)))   # (1, Dp) stays in-kernel

    # --- Hoisted input projection at full MXU occupancy (M = B*T rows), time-major. ---
    x_p = jnp.pad(x.astype(jnp.float32), ((0, Bp - B), (0, T_pad - T), (0, Dp - D)))
    gates_x = (jnp.einsum('btd,dg->tbg', x_p, w_ih_cat,
                          preferred_element_type=jnp.float32)
               + b_ih_cat + b_hh_rz)             # (T_pad, Bp, 3*Dp)

    lengths_p = jnp.pad(lengths.astype(jnp.int32), (0, Bp - B))[:, None]  # (Bp, 1)

    num_bt = Bp // Bt
    num_tc = T_pad // Tc

    out_tm = pl.pallas_call(
        gru_kernel,
        out_shape=jax.ShapeDtypeStruct((T_pad, Bp, Dp), jnp.float32),
        grid_spec=pltpu.PrefetchScalarGridSpec(
            num_scalar_prefetch=0,
            grid=(num_bt, num_tc),
            in_specs=[
                pl.BlockSpec((Bt, 1), lambda b, c: (b, 0)),            # lengths (resident)
                pl.BlockSpec((Tc, Bt, 3 * Dp), lambda b, c: (c, b, 0)),  # pre-activations
                pl.BlockSpec((Dp, 3 * Dp), lambda b, c: (0, 0)),       # fused W_hh (resident)
                pl.BlockSpec((1, Dp), lambda b, c: (0, 0)),            # b_hn (resident)
            ],
            out_specs=pl.BlockSpec((Tc, Bt, Dp), lambda b, c: (c, b, 0)),
            scratch_shapes=[pltpu.VMEM((Bt, Dp), jnp.float32)],        # carried hidden state
        ),
        compiler_params=pltpu.CompilerParams(
            # batch tiles are independent (megacore on v7x); time is a serial recurrence.
            dimension_semantics=("parallel", "arbitrary"),
        ),
    )(lengths_p, gates_x, w_hh_cat, b_hh_n)

    # Consumer wants the PyTorch batch-first layout back; slice away padding.
    return jnp.transpose(out_tm, (1, 0, 2))[:B, :T, :D]


def gru_packed_ref(x, lengths, w_ih_t, w_hh_t, b_ih, b_hh):
    """Pure-JAX reference (lax.scan) mirroring torch.nn.GRU + pack/pad semantics."""
    B, T, D = x.shape
    mask = (jnp.arange(T)[None, :] < lengths[:, None]).astype(jnp.float32)  # (B, T)

    def step(h, inp):
        x_t, m_t = inp
        m = m_t[:, None]
        i_r = x_t @ w_ih_t[0] + b_ih[0]
        i_z = x_t @ w_ih_t[1] + b_ih[1]
        i_n = x_t @ w_ih_t[2] + b_ih[2]
        h_r = h @ w_hh_t[0] + b_hh[0]
        h_z = h @ w_hh_t[1] + b_hh[1]
        h_n = h @ w_hh_t[2] + b_hh[2]
        r = jax.nn.sigmoid(i_r + h_r)
        z = jax.nn.sigmoid(i_z + h_z)
        n = jnp.tanh(i_n + r * h_n)
        h_cand = (1.0 - z) * n + z * h
        h_new = m * h_cand + (1.0 - m) * h
        return h_new, m * h_cand

    xs = (jnp.transpose(x, (1, 0, 2)), jnp.transpose(mask, (1, 0)))
    _, outs = jax.lax.scan(step, jnp.zeros((B, D), jnp.float32), xs)
    return jnp.transpose(outs, (1, 0, 2))


def init_gru_params(key, d_model):
    """Deterministic init matching torch.nn.GRU parameter shapes (gate order r,z,n).

    Stored pre-transposed as (3, D, D) so the math is x @ W^T / h @ W^T directly.
    """
    k = 1.0 / np.sqrt(d_model)
    keys = jax.random.split(key, 4)
    w_ih_t = jax.random.uniform(keys[0], (3, d_model, d_model), jnp.float32, -k, k)
    w_hh_t = jax.random.uniform(keys[1], (3, d_model, d_model), jnp.float32, -k, k)
    b_ih = jax.random.uniform(keys[2], (3, 1, d_model), jnp.float32, -k, k)
    b_hh = jax.random.uniform(keys[3], (3, 1, d_model), jnp.float32, -k, k)
    return w_ih_t, w_hh_t, b_ih, b_hh


if __name__ == "__main__":
    B, T, D = 2, 8, 32
    root = jax.random.PRNGKey(0)
    k_x, k_p = jax.random.split(root)

    x = jax.random.normal(k_x, (B, T, D), jnp.float32)
    lengths = jnp.array([8, 5], dtype=jnp.int32)
    masks = (jnp.arange(T)[None, :] < lengths[:, None]).astype(jnp.float32)  # (B, T)

    w_ih_t, w_hh_t, b_ih, b_hh = init_gru_params(k_p, D)

    # time_chunk=4 exercises hidden-state carry across grid steps (T=8 -> 2 chunks).
    out = gru_packed_pallas(x, masks, lengths, w_ih_t, w_hh_t, b_ih, b_hh, time_chunk=4)
    out = jax.block_until_ready(out)

    ref = gru_packed_ref(x, lengths, w_ih_t, w_hh_t, b_ih, b_hh)
    np.testing.assert_allclose(np.asarray(out), np.asarray(ref), atol=1e-5, rtol=1e-5)

    print("KERNEL_OK")
</pallas_src>

<mosaic_0001>
module attributes {stable_mosaic.version = 11 : i64} {
  func.func @gru_kernel(%arg0: i32, %arg1: i32, %arg2: memref<8x1xi32, #tpu.memory_space<vmem>>, %arg3: memref<4x8x384xf32, #tpu.memory_space<vmem>>, %arg4: memref<128x384xf32, #tpu.memory_space<vmem>>, %arg5: memref<1x128xf32, #tpu.memory_space<vmem>>, %arg6: memref<4x8x128xf32, #tpu.memory_space<vmem>>, %arg7: memref<8x128xf32, #tpu.memory_space<vmem>>) attributes {dimension_semantics = [#tpu.dimension_semantics<parallel>, #tpu.dimension_semantics<arbitrary>], iteration_bounds = array<i64: 1, 2>, scalar_prefetch = 0 : i64, scratch_operands = 1 : i64, tpu.core_type = #tpu.core_type<tc>, window_params = [{transform_indices = @transform_0, window_bounds = array<i64: 8, 1>}, {transform_indices = @transform_1, window_bounds = array<i64: 4, 8, 384>}, {pipeline_mode = #tpu.pipeline_mode<synchronous>, transform_indices = @transform_2, window_bounds = array<i64: 128, 384>}, {pipeline_mode = #tpu.pipeline_mode<synchronous>, transform_indices = @transform_3, window_bounds = array<i64: 1, 128>}, {transform_indices = @transform_4, window_bounds = array<i64: 4, 8, 128>}]} {
    %c0_i32 = arith.constant 0 : i32
    %0 = arith.cmpi eq, %arg1, %c0_i32 : i32
    %1 = arith.extui %0 : i1 to i32
    %c0_i32_0 = arith.constant 0 : i32
    %2 = arith.cmpi ne, %1, %c0_i32_0 : i32
    scf.if %2 {
      %cst_45 = arith.constant 0.000000e+00 : f32
      %192 = vector.broadcast %cst_45 : f32 to vector<8x128xf32>
      %c0_46 = arith.constant 0 : index
      %c0_47 = arith.constant 0 : index
      %193 = vector.load %arg7[%c0_46, %c0_47] : memref<8x128xf32, #tpu.memory_space<vmem>>, vector<8x128xf32>
      tpu.vector_store %arg7[%c0_46, %c0_47], %192 {strides = array<i32>} : memref<8x128xf32, #tpu.memory_space<vmem>>, vector<8x128xf32>,
    } else {
    }
    %c0 = arith.constant 0 : index
    %c0_1 = arith.constant 0 : index
    %3 = vector.load %arg2[%c0, %c0_1] : memref<8x1xi32, #tpu.memory_space<vmem>>, vector<8x1xi32>
    %c0_2 = arith.constant 0 : index
    %c0_3 = arith.constant 0 : index
    %4 = vector.load %arg5[%c0_2, %c0_3] : memref<1x128xf32, #tpu.memory_space<vmem>>, vector<1x128xf32>
    %c4_i32 = arith.constant 4 : i32
    %5 = arith.muli %arg1, %c4_i32 : i32
    %c0_4 = arith.constant 0 : index
    %c0_5 = arith.constant 0 : index
    %6 = vector.load %arg7[%c0_4, %c0_5] : memref<8x128xf32, #tpu.memory_space<vmem>>, vector<8x128xf32>
    %c0_i32_6 = arith.constant 0 : i32
    %7 = arith.index_cast %c0_i32_6 : i32 to index
    %c0_7 = arith.constant 0 : index
    %c0_8 = arith.constant 0 : index
    %8 = vector.load %arg3[%7, %c0_7, %c0_8] : memref<4x8x384xf32, #tpu.memory_space<vmem>>, vector<1x8x384xf32>
    %9 = vector.shape_cast %8 : vector<1x8x384xf32> to vector<8x384xf32>
    %c0_9 = arith.constant 0 : index
    %c0_10 = arith.constant 0 : index
    %10 = vector.load %arg4[%c0_9, %c0_10] : memref<128x384xf32, #tpu.memory_space<vmem>>, vector<128x384xf32>
    %cst = arith.constant dense<0.000000e+00> : vector<8x384xf32>
    %11 = tpu.matmul %6, %10, %cst {dimension_numbers = #tpu.dot_dimension_numbers<[1], [0], [0], [1], [0, 0, 1, 1], [], []>} : vector<8x128xf32>, vector<128x384xf32>, vector<8x384xf32> -> vector<8x384xf32>
    %12 = vector.extract_strided_slice %9 {offsets = [0, 0], sizes = [8, 128], strides = [1, 1]} : vector<8x384xf32> to vector<8x128xf32>
    %13 = vector.extract_strided_slice %11 {offsets = [0, 0], sizes = [8, 128], strides = [1, 1]} : vector<8x384xf32> to vector<8x128xf32>
    %14 = arith.addf %12, %13 : vector<8x128xf32>
    %15 = arith.negf %14 : vector<8x128xf32>
    %16 = math.exp %15 : vector<8x128xf32>
    %cst_11 = arith.constant 1.000000e+00 : f32
    %17 = vector.broadcast %cst_11 : f32 to vector<8x128xf32>
    %18 = arith.addf %17, %16 : vector<8x128xf32>
    %19 = arith.divf %17, %18 : vector<8x128xf32>
    %20 = vector.extract_strided_slice %9 {offsets = [0, 128], sizes = [8, 128], strides = [1, 1]} : vector<8x384xf32> to vector<8x128xf32>
    %21 = vector.extract_strided_slice %11 {offsets = [0, 128], sizes = [8, 128], strides = [1, 1]} : vector<8x384xf32> to vector<8x128xf32>
    %22 = arith.addf %20, %21 : vector<8x128xf32>
    %23 = arith.negf %22 : vector<8x128xf32>
    %24 = math.exp %23 : vector<8x128xf32>
    %cst_12 = arith.constant 1.000000e+00 : f32
    %25 = vector.broadcast %cst_12 : f32 to vector<8x128xf32>
    %26 = arith.addf %25, %24 : vector<8x128xf32>
    %27 = arith.divf %25, %26 : vector<8x128xf32>
    %28 = vector.extract_strided_slice %9 {offsets = [0, 256], sizes = [8, 128], strides = [1, 1]} : vector<8x384xf32> to vector<8x128xf32>
    %29 = vector.extract_strided_slice %11 {offsets = [0, 256], sizes = [8, 128], strides = [1, 1]} : vector<8x384xf32> to vector<8x128xf32>
    %30 = vector.broadcast %4 : vector<1x128xf32> to vector<8x128xf32>
    %31 = arith.addf %29, %30 : vector<8x128xf32>
    %32 = arith.mulf %19, %31 : vector<8x128xf32>
    %33 = arith.addf %28, %32 : vector<8x128xf32>
    %34 = math.tanh %33 : vector<8x128xf32>
    %35 = arith.subf %6, %34 : vector<8x128xf32>
    %36 = arith.mulf %27, %35 : vector<8x128xf32>
    %37 = arith.addf %34, %36 : vector<8x128xf32>
    %38 = arith.addi %5, %c0_i32_6 : i32
    %39 = vector.broadcast %38 : i32 to vector<8x1xi32>
    %40 = arith.cmpi slt, %39, %3 : vector<8x1xi32>
    %41 = arith.extui %40 : vector<8x1xi1> to vector<8x1xi32>
    %42 = arith.sitofp %41 : vector<8x1xi32> to vector<8x1xf32>
    %43 = vector.broadcast %42 : vector<8x1xf32> to vector<8x128xf32>
    %44 = arith.mulf %43, %37 : vector<8x128xf32>
    %45 = arith.index_cast %c0_i32_6 : i32 to index
    %c0_13 = arith.constant 0 : index
    %c0_14 = arith.constant 0 : index
    %46 = vector.load %arg6[%45, %c0_13, %c0_14] : memref<4x8x128xf32, #tpu.memory_space<vmem>>, vector<1x8x128xf32>
    %47 = vector.shape_cast %46 : vector<1x8x128xf32> to vector<8x128xf32>
    %48 = vector.shape_cast %44 : vector<8x128xf32> to vector<1x8x128xf32>
    tpu.vector_store %arg6[%45, %c0_13, %c0_14], %48 {strides = array<i32>} : memref<4x8x128xf32, #tpu.memory_space<vmem>>, vector<1x8x128xf32>,
    %49 = arith.subf %37, %6 : vector<8x128xf32>
    %50 = vector.broadcast %42 : vector<8x1xf32> to vector<8x128xf32>
    %51 = arith.mulf %50, %49 : vector<8x128xf32>
    %52 = arith.addf %6, %51 : vector<8x128xf32>
    %c1_i32 = arith.constant 1 : i32
    %53 = arith.index_cast %c1_i32 : i32 to index
    %c0_15 = arith.constant 0 : index
    %c0_16 = arith.constant 0 : index
    %54 = vector.load %arg3[%53, %c0_15, %c0_16] : memref<4x8x384xf32, #tpu.memory_space<vmem>>, vector<1x8x384xf32>
    %55 = vector.shape_cast %54 : vector<1x8x384xf32> to vector<8x384xf32>
    %c0_17 = arith.constant 0 : index
    %c0_18 = arith.constant 0 : index
    %56 = vector.load %arg4[%c0_17, %c0_18] : memref<128x384xf32, #tpu.memory_space<vmem>>, vector<128x384xf32>
    %cst_19 = arith.constant dense<0.000000e+00> : vector<8x384xf32>
    %57 = tpu.matmul %52, %56, %cst_19 {dimension_numbers = #tpu.dot_dimension_numbers<[1], [0], [0], [1], [0, 0, 1, 1], [], []>} : vector<8x128xf32>, vector<128x384xf32>, vector<8x384xf32> -> vector<8x384xf32>
    %58 = vector.extract_strided_slice %55 {offsets = [0, 0], sizes = [8, 128], strides = [1, 1]} : vector<8x384xf32> to vector<8x128xf32>
    %59 = vector.extract_strided_slice %57 {offsets = [0, 0], sizes = [8, 128], strides = [1, 1]} : vector<8x384xf32> to vector<8x128xf32>
    %60 = arith.addf %58, %59 : vector<8x128xf32>
    %61 = arith.negf %60 : vector<8x128xf32>
    %62 = math.exp %61 : vector<8x128xf32>
    %cst_20 = arith.constant 1.000000e+00 : f32
    %63 = vector.broadcast %cst_20 : f32 to vector<8x128xf32>
    %64 = arith.addf %63, %62 : vector<8x128xf32>
    %65 = arith.divf %63, %64 : vector<8x128xf32>
    %66 = vector.extract_strided_slice %55 {offsets = [0, 128], sizes = [8, 128], strides = [1, 1]} : vector<8x384xf32> to vector<8x128xf32>
    %67 = vector.extract_strided_slice %57 {offsets = [0, 128], sizes = [8, 128], strides = [1, 1]} : vector<8x384xf32> to vector<8x128xf32>
    %68 = arith.addf %66, %67 : vector<8x128xf32>
    %69 = arith.negf %68 : vector<8x128xf32>
    %70 = math.exp %69 : vector<8x128xf32>
    %cst_21 = arith.constant 1.000000e+00 : f32
    %71 = vector.broadcast %cst_21 : f32 to vector<8x128xf32>
    %72 = arith.addf %71, %70 : vector<8x128xf32>
    %73 = arith.divf %71, %72 : vector<8x128xf32>
    %74 = vector.extract_strided_slice %55 {offsets = [0, 256], sizes = [8, 128], strides = [1, 1]} : vector<8x384xf32> to vector<8x128xf32>
    %75 = vector.extract_strided_slice %57 {offsets = [0, 256], sizes = [8, 128], strides = [1, 1]} : vector<8x384xf32> to vector<8x128xf32>
    %76 = vector.broadcast %4 : vector<1x128xf32> to vector<8x128xf32>
    %77 = arith.addf %75, %76 : vector<8x128xf32>
    %78 = arith.mulf %65, %77 : vector<8x128xf32>
    %79 = arith.addf %74, %78 : vector<8x128xf32>
    %80 = math.tanh %79 : vector<8x128xf32>
    %81 = arith.subf %52, %80 : vector<8x128xf32>
    %82 = arith.mulf %73, %81 : vector<8x128xf32>
    %83 = arith.addf %80, %82 : vector<8x128xf32>
    %84 = arith.addi %5, %c1_i32 : i32
    %85 = vector.broadcast %84 : i32 to vector<8x1xi32>
    %86 = arith.cmpi slt, %85, %3 : vector<8x1xi32>
    %87 = arith.extui %86 : vector<8x1xi1> to vector<8x1xi32>
    %88 = arith.sitofp %87 : vector<8x1xi32> to vector<8x1xf32>
    %89 = vector.broadcast %88 : vector<8x1xf32> to vector<8x128xf32>
    %90 = arith.mulf %89, %83 : vector<8x128xf32>
    %91 = arith.index_cast %c1_i32 : i32 to index
    %c0_22 = arith.constant 0 : index
    %c0_23 = arith.constant 0 : index
    %92 = vector.load %arg6[%91, %c0_22, %c0_23] : memref<4x8x128xf32, #tpu.memory_space<vmem>>, vector<1x8x128xf32>
    %93 = vector.shape_cast %92 : vector<1x8x128xf32> to vector<8x128xf32>
    %94 = vector.shape_cast %90 : vector<8x128xf32> to vector<1x8x128xf32>
    tpu.vector_store %arg6[%91, %c0_22, %c0_23], %94 {strides = array<i32>} : memref<4x8x128xf32, #tpu.memory_space<vmem>>, vector<1x8x128xf32>,
    %95 = arith.subf %83, %52 : vector<8x128xf32>
    %96 = vector.broadcast %88 : vector<8x1xf32> to vector<8x128xf32>
    %97 = arith.mulf %96, %95 : vector<8x128xf32>
    %98 = arith.addf %52, %97 : vector<8x128xf32>
    %c2_i32 = arith.constant 2 : i32
    %99 = arith.index_cast %c2_i32 : i32 to index
    %c0_24 = arith.constant 0 : index
    %c0_25 = arith.constant 0 : index
    %100 = vector.load %arg3[%99, %c0_24, %c0_25] : memref<4x8x384xf32, #tpu.memory_space<vmem>>, vector<1x8x384xf32>
    %101 = vector.shape_cast %100 : vector<1x8x384xf32> to vector<8x384xf32>
    %c0_26 = arith.constant 0 : index
    %c0_27 = arith.constant 0 : index
    %102 = vector.load %arg4[%c0_26, %c0_27] : memref<128x384xf32, #tpu.memory_space<vmem>>, vector<128x384xf32>
    %cst_28 = arith.constant dense<0.000000e+00> : vector<8x384xf32>
    %103 = tpu.matmul %98, %102, %cst_28 {dimension_numbers = #tpu.dot_dimension_numbers<[1], [0], [0], [1], [0, 0, 1, 1], [], []>} : vector<8x128xf32>, vector<128x384xf32>, vector<8x384xf32> -> vector<8x384xf32>
    %104 = vector.extract_strided_slice %101 {offsets = [0, 0], sizes = [8, 128], strides = [1, 1]} : vector<8x384xf32> to vector<8x128xf32>
    %105 = vector.extract_strided_slice %103 {offsets = [0, 0], sizes = [8, 128], strides = [1, 1]} : vector<8x384xf32> to vector<8x128xf32>
    %106 = arith.addf %104, %105 : vector<8x128xf32>
    %107 = arith.negf %106 : vector<8x128xf32>
    %108 = math.exp %107 : vector<8x128xf32>
    %cst_29 = arith.constant 1.000000e+00 : f32
    %109 = vector.broadcast %cst_29 : f32 to vector<8x128xf32>
    %110 = arith.addf %109, %108 : vector<8x128xf32>
    %111 = arith.divf %109, %110 : vector<8x128xf32>
    %112 = vector.extract_strided_slice %101 {offsets = [0, 128], sizes = [8, 128], strides = [1, 1]} : vector<8x384xf32> to vector<8x128xf32>
    %113 = vector.extract_strided_slice %103 {offsets = [0, 128], sizes = [8, 128], strides = [1, 1]} : vector<8x384xf32> to vector<8x128xf32>
    %114 = arith.addf %112, %113 : vector<8x128xf32>
    %115 = arith.negf %114 : vector<8x128xf32>
    %116 = math.exp %115 : vector<8x128xf32>
    %cst_30 = arith.constant 1.000000e+00 : f32
    %117 = vector.broadcast %cst_30 : f32 to vector<8x128xf32>
    %118 = arith.addf %117, %116 : vector<8x128xf32>
    %119 = arith.divf %117, %118 : vector<8x128xf32>
    %120 = vector.extract_strided_slice %101 {offsets = [0, 256], sizes = [8, 128], strides = [1, 1]} : vector<8x384xf32> to vector<8x128xf32>
    %121 = vector.extract_strided_slice %103 {offsets = [0, 256], sizes = [8, 128], strides = [1, 1]} : vector<8x384xf32> to vector<8x128xf32>
    %122 = vector.broadcast %4 : vector<1x128xf32> to vector<8x128xf32>
    %123 = arith.addf %121, %122 : vector<8x128xf32>
    %124 = arith.mulf %111, %123 : vector<8x128xf32>
    %125 = arith.addf %120, %124 : vector<8x128xf32>
    %126 = math.tanh %125 : vector<8x128xf32>
    %127 = arith.subf %98, %126 : vector<8x128xf32>
    %128 = arith.mulf %119, %127 : vector<8x128xf32>
    %129 = arith.addf %126, %128 : vector<8x128xf32>
    %130 = arith.addi %5, %c2_i32 : i32
    %131 = vector.broadcast %130 : i32 to vector<8x1xi32>
    %132 = arith.cmpi slt, %131, %3 : vector<8x1xi32>
    %133 = arith.extui %132 : vector<8x1xi1> to vector<8x1xi32>
    %134 = arith.sitofp %133 : vector<8x1xi32> to vector<8x1xf32>
    %135 = vector.broadcast %134 : vector<8x1xf32> to vector<8x128xf32>
    %136 = arith.mulf %135, %129 : vector<8x128xf32>
    %137 = arith.index_cast %c2_i32 : i32 to index
    %c0_31 = arith.constant 0 : index
    %c0_32 = arith.constant 0 : index
    %138 = vector.load %arg6[%137, %c0_31, %c0_32] : memref<4x8x128xf32, #tpu.memory_space<vmem>>, vector<1x8x128xf32>
    %139 = vector.shape_cast %138 : vector<1x8x128xf32> to vector<8x128xf32>
    %140 = vector.shape_cast %136 : vector<8x128xf32> to vector<1x8x128xf32>
    tpu.vector_store %arg6[%137, %c0_31, %c0_32], %140 {strides = array<i32>} : memref<4x8x128xf32, #tpu.memory_space<vmem>>, vector<1x8x128xf32>,
    %141 = arith.subf %129, %98 : vector<8x128xf32>
    %142 = vector.broadcast %134 : vector<8x1xf32> to vector<8x128xf32>
    %143 = arith.mulf %142, %141 : vector<8x128xf32>
    %144 = arith.addf %98, %143 : vector<8x128xf32>
    %c3_i32 = arith.constant 3 : i32
    %145 = arith.index_cast %c3_i32 : i32 to index
    %c0_33 = arith.constant 0 : index
    %c0_34 = arith.constant 0 : index
    %146 = vector.load %arg3[%145, %c0_33, %c0_34] : memref<4x8x384xf32, #tpu.memory_space<vmem>>, vector<1x8x384xf32>
    %147 = vector.shape_cast %146 : vector<1x8x384xf32> to vector<8x384xf32>
    %c0_35 = arith.constant 0 : index
    %c0_36 = arith.constant 0 : index
    %148 = vector.load %arg4[%c0_35, %c0_36] : memref<128x384xf32, #tpu.memory_space<vmem>>, vector<128x384xf32>
    %cst_37 = arith.constant dense<0.000000e+00> : vector<8x384xf32>
    %149 = tpu.matmul %144, %148, %cst_37 {dimension_numbers = #tpu.dot_dimension_numbers<[1], [0], [0], [1], [0, 0, 1, 1], [], []>} : vector<8x128xf32>, vector<128x384xf32>, vector<8x384xf32> -> vector<8x384xf32>
    %150 = vector.extract_strided_slice %147 {offsets = [0, 0], sizes = [8, 128], strides = [1, 1]} : vector<8x384xf32> to vector<8x128xf32>
    %151 = vector.extract_strided_slice %149 {offsets = [0, 0], sizes = [8, 128], strides = [1, 1]} : vector<8x384xf32> to vector<8x128xf32>
    %152 = arith.addf %150, %151 : vector<8x128xf32>
    %153 = arith.negf %152 : vector<8x128xf32>
    %154 = math.exp %153 : vector<8x128xf32>
    %cst_38 = arith.constant 1.000000e+00 : f32
    %155 = vector.broadcast %cst_38 : f32 to vector<8x128xf32>
    %156 = arith.addf %155, %154 : vector<8x128xf32>
    %157 = arith.divf %155, %156 : vector<8x128xf32>
    %158 = vector.extract_strided_slice %147 {offsets = [0, 128], sizes = [8, 128], strides = [1, 1]} : vector<8x384xf32> to vector<8x128xf32>
    %159 = vector.extract_strided_slice %149 {offsets = [0, 128], sizes = [8, 128], strides = [1, 1]} : vector<8x384xf32> to vector<8x128xf32>
    %160 = arith.addf %158, %159 : vector<8x128xf32>
    %161 = arith.negf %160 : vector<8x128xf32>
    %162 = math.exp %161 : vector<8x128xf32>
    %cst_39 = arith.constant 1.000000e+00 : f32
    %163 = vector.broadcast %cst_39 : f32 to vector<8x128xf32>
    %164 = arith.addf %163, %162 : vector<8x128xf32>
    %165 = arith.divf %163, %164 : vector<8x128xf32>
    %166 = vector.extract_strided_slice %147 {offsets = [0, 256], sizes = [8, 128], strides = [1, 1]} : vector<8x384xf32> to vector<8x128xf32>
    %167 = vector.extract_strided_slice %149 {offsets = [0, 256], sizes = [8, 128], strides = [1, 1]} : vector<8x384xf32> to vector<8x128xf32>
    %168 = vector.broadcast %4 : vector<1x128xf32> to vector<8x128xf32>
    %169 = arith.addf %167, %168 : vector<8x128xf32>
    %170 = arith.mulf %157, %169 : vector<8x128xf32>
    %171 = arith.addf %166, %170 : vector<8x128xf32>
    %172 = math.tanh %171 : vector<8x128xf32>
    %173 = arith.subf %144, %172 : vector<8x128xf32>
    %174 = arith.mulf %165, %173 : vector<8x128xf32>
    %175 = arith.addf %172, %174 : vector<8x128xf32>
    %176 = arith.addi %5, %c3_i32 : i32
    %177 = vector.broadcast %176 : i32 to vector<8x1xi32>
    %178 = arith.cmpi slt, %177, %3 : vector<8x1xi32>
    %179 = arith.extui %178 : vector<8x1xi1> to vector<8x1xi32>
    %180 = arith.sitofp %179 : vector<8x1xi32> to vector<8x1xf32>
    %181 = vector.broadcast %180 : vector<8x1xf32> to vector<8x128xf32>
    %182 = arith.mulf %181, %175 : vector<8x128xf32>
    %183 = arith.index_cast %c3_i32 : i32 to index
    %c0_40 = arith.constant 0 : index
    %c0_41 = arith.constant 0 : index
    %184 = vector.load %arg6[%183, %c0_40, %c0_41] : memref<4x8x128xf32, #tpu.memory_space<vmem>>, vector<1x8x128xf32>
    %185 = vector.shape_cast %184 : vector<1x8x128xf32> to vector<8x128xf32>
    %186 = vector.shape_cast %182 : vector<8x128xf32> to vector<1x8x128xf32>
    tpu.vector_store %arg6[%183, %c0_40, %c0_41], %186 {strides = array<i32>} : memref<4x8x128xf32, #tpu.memory_space<vmem>>, vector<1x8x128xf32>,
    %187 = arith.subf %175, %144 : vector<8x128xf32>
    %188 = vector.broadcast %180 : vector<8x1xf32> to vector<8x128xf32>
    %189 = arith.mulf %188, %187 : vector<8x128xf32>
    %190 = arith.addf %144, %189 : vector<8x128xf32>
    %c4_i32_42 = arith.constant 4 : i32
    %c0_43 = arith.constant 0 : index
    %c0_44 = arith.constant 0 : index
    %191 = vector.load %arg7[%c0_43, %c0_44] : memref<8x128xf32, #tpu.memory_space<vmem>>, vector<8x128xf32>
    tpu.vector_store %arg7[%c0_43, %c0_44], %190 {strides = array<i32>} : memref<8x128xf32, #tpu.memory_space<vmem>>, vector<8x128xf32>,
    return
  }
  func.func @transform_0(%arg0: i32, %arg1: i32) -> (i32, i32) {
    %c0_i32 = arith.constant 0 : i32
    %c0_i32_0 = arith.constant 0 : i32
    return %arg0, %c0_i32 : i32, i32
  }
  func.func @transform_1(%arg0: i32, %arg1: i32) -> (i32, i32, i32) {
    %c0_i32 = arith.constant 0 : i32
    %c0_i32_0 = arith.constant 0 : i32
    return %arg1, %arg0, %c0_i32 : i32, i32, i32
  }
  func.func @transform_2(%arg0: i32, %arg1: i32) -> (i32, i32) {
    %c0_i32 = arith.constant 0 : i32
    %c0_i32_0 = arith.constant 0 : i32
    %c0_i32_1 = arith.constant 0 : i32
    return %c0_i32, %c0_i32_0 : i32, i32
  }
  func.func @transform_3(%arg0: i32, %arg1: i32) -> (i32, i32) {
    %c0_i32 = arith.constant 0 : i32
    %c0_i32_0 = arith.constant 0 : i32
    %c0_i32_1 = arith.constant 0 : i32
    return %c0_i32, %c0_i32_0 : i32, i32
  }
  func.func @transform_4(%arg0: i32, %arg1: i32) -> (i32, i32, i32) {
    %c0_i32 = arith.constant 0 : i32
    %c0_i32_0 = arith.constant 0 : i32
    return %arg1, %arg0, %c0_i32 : i32, i32, i32
  }
}

</mosaic_0001>

<bundles_post_ra>
// kernel: tpu_custom_call.1
= control target key start
LH: loop header
LB: loop body
LE: loop exit
PB: predicated region body
PF: predicated region fallthrough
CT: control target
= control target key end

     0   :  { %9 = vsyncpa [#allocation4], 0  ;;  %s2602_s0 = inlined_call_operand.vmem [shape: s32[8,1], index: 0, kind: input, shape index: {}]   ;;  %s2603_s1 = inlined_call_operand.hbm [shape: f32[8,8,384], index: 1, kind: input, shape index: {}]   ;;  %s2604_s2 = inlined_call_operand.hbm [shape: f32[128,384], index: 2, kind: input, shape index: {}]   ;;  %s2605_s3 = inlined_call_operand.vmem [shape: f32[1,128], index: 3, kind: input, shape index: {}]   ;;  %s2606_s4 = inlined_call_operand.hbm [shape: f32[8,8,128], index: 4, kind: output, shape index: {}]  }
   0x1   :  { %11 = vsyncpa [#allocation4 + $0x1], 0 }
   0x2   :  { %12 = vsyncpa [#allocation7], 0 }
   0x3   :  { %13 = vsyncpa [#allocation5], 0 }
   0x4   :  { %15 = vsyncpa [#allocation5 + $0x1], 0  ;;  %s2115_s15 = smov 0   ;;  %s2117_s16 = smov 0  }
   0x5   :  { %s2119_s17 = smov 0   ;;  %s2121_s18 = smov 0  }
   0x6   :  { %s2123_s19 = smov 0   ;;  %s2125_s20 = smov 0  }
   0x7 LB: > { %s1328_s21 = sadd.s32 4294967295, %s2076_s20   ;;  %s1329_s22 = sadd.s32 4294967294, %s2076_s20   ;;  %s2076_s20 = sphi %s2125_s20, %s21_s20   ;;  %s2072_s19 = sphi %s2123_s19, %s2629_s19   ;;  %s2068_s18 = sphi %s2121_s18, %s2628_s18   ;;  %s2064_s17 = sphi %s2119_s17, %s2627_s17   ;;  %s2060_s16 = sphi %s2117_s16, %s2626_s16   ;;  %s2056_s15 = sphi %s2115_s15, %s2625_s15  }
   0x8   : > { %p81_p0 = scmp.ne.s32.totalorder %s2060_s16, %s2056_s15  ;;  %p2149_p1 = scmp.eq.s32.totalorder %s1328_s21, 0 }
   0x9   : > { %p2153_p2 = scmp.eq.s32.totalorder %s1328_s21, 1  ;;  %p155_p3 = scmp.eq.s32.totalorder %s1329_s22, 1 }
   0xa   : > { %s2611_s23 = scalar_select %p2149_p1, 1, 0 }
   0xb   : > { %s2612_s24 = scalar_select %p2153_p2, 1, 0 }
   0xc   : > { %p2159_p4 = por %p2149_p1, %p81_p0  ;;  %p1330_p5 = scmp.ge.s32.totalorder %s2076_s20, 1 }
   0xd   : > { %p2164_p6 = por %p155_p3, %p81_p0  ;;  %p162_p7 = scmp.lt.s32.totalorder %s2076_s20, 3 }
   0xe   : > { %s2613_s25 = scalar_select %p2159_p4, 1, 0 }
   0xf   : > { %s2614_s26 = scalar_select %p2164_p6, 1, 0 }
  0x10   : > { %p2169_p8 = pnand %p1330_p5, %p162_p7  ;;  %s2078_s28 = smov [#allocation6]  }
  0x11   : > { %s181_s29 = sshll.u32 %s2078_s28, 4  ;;  %s30_s5 = sadd.s32 1, %s2072_s19  ;;  %s182_s29 = int_to_ptr.vmem [resolvable:$true] %s181_s29 }
  0x12   : > { %s2615_s27 = scalar_select %p2169_p8, 1, 0 }
  0x13   : > { %p1816_p9 = pneg %p2169_p8  ;;  %s1932_s8 = scalar_lea.hbm %s2604_s2, 6144 }
  0x14   : > { %p1933_p12 = scmp.ne.s32.totalorder %s2604_s2, %s1932_s8  ;;  %p1939_p5 = scmp.lt.u32.totalorder %s1932_s8, %s2604_s2 }
  0x15   : > { %p2178_p11 = pnand %p1816_p9, %p2149_p1 }
  0x17   : > { %p1934_p13 = pneg %p2178_p11 }
  0x19   : > { %p1935_p0 = pnand %p1934_p13, %p1933_p12 }
  0x1b   : > { %p1936_p3 = pneg %p1935_p0 }
  0x1d   : > { %p1941_p7 = pnand %p1939_p5, %p1936_p3 }
  0x1f   : > { %1944 = shalt.err (!%p1941_p7)
}
  0x20   : > { %s1945_s13 = scalar_lea.vmem %s182_s29, 6144  ;;  %p1953_p1 = scmp.lt.s32.totalorder %s182_s29, %s182_s29 }
  0x21   : > { %p1946_p9 = scmp.ne.s32.totalorder %s182_s29, %s1945_s13  ;;  %p1954_p4 = scmp.lt.s32.totalorder %s1945_s13, %s1945_s13 }
  0x23   : > { %p1948_p10 = pnand %p1946_p9, %p1934_p13  ;;  %p1955_p8 = por %p1954_p4, %p1953_p1 }
  0x25   : > { %p1949_p6 = pneg %p1948_p10 }
  0x27   : > { %p1956_p2 = pnand %p1955_p8, %p1949_p6 }
  0x29   : > { %1959 = shalt.err (!%p1956_p2)
}
  0x2a   : > { %s2079_s14 = smov 384   ;;  %s2080_s21 = smov 24  }
  0x2b   : > { %1819 = dma.hbm_to_vmem [thread:$0]  (!%p2178_p11), %s2604_s2, 6144, %s182_s29, [#allocation7], %s2079_s14, %s2079_s14, %s2080_s21  }
  0x2c   : > { %p31_p1 = scmp.ge.s32.totalorder %s30_s5, 2  ;;  %s68_s6 = sadd.s32 1, %s2064_s17 }
  0x2d   : > { %p75_p2 = scmp.ne.s32.totalorder %s2064_s17, %s2060_s16  ;;  %p76_p4 = scmp.eq.s32.totalorder %s2076_s20, 0 }
  0x2e   : > { %s2631_s5 = smov (%p31_p1, %s30_s5), 0  ;;  %p2617_p8 = scmp.ne.s32.totalorder %s2612_s24, 0 }
  0x2f   : > { %p77_p6 = por %p76_p4, %p75_p2  ;;  %s63_s30 = ssub.s32 %s2072_s19, %s2631_s5 }
  0x30   : > { %p2210_p10 = por %p2617_p8, %p75_p2  ;;  %p1829_p12 = scmp.lt.s32.totalorder %s2076_s20, 2 }
  0x31   : > { %p66_p13 = scmp.eq.s32.totalorder %s63_s30, 0  ;;  %s198_s8 = sand.u32 1, %s2064_s17  }
  0x32   : > { %s1805_s9 = smul.u32 96, %s198_s8  ;;  %p2222_p11 = pnand %p1829_p12, %p77_p6 }
  0x33   : > { %s2219_s10 = scalar_select %p66_p13, %s2064_s17, %s68_s6  }
  0x34   : > { %s1806_s29 = smul.u32 1536, %s2072_s19  ;;  %s202_s11 = scalar_lea.vmem [#allocation3], %s1805_s9 }
  0x35   : > { %s212_s12 = sshll.u32 %s202_s11, 4  ;;  %s2233_s6 = scalar_lea.sflag [#allocation4], %s198_s8  ;;  %s2231_s12 = int_to_ptr.vmem [resolvable:$true] %s212_s12 }
  0x36   : > { %s2229_s28 = scalar_lea.hbm %s2603_s1, %s1806_s29  ;;  %p1962_p3 = pneg %p2222_p11 }
  0x37   : > { %s1960_s30 = scalar_lea.hbm %s2229_s28, 1536  ;;  %s1965_s29 = scalar_lea.hbm %s2603_s1, 3072 }
  0x38   : > { %p1961_p0 = scmp.ne.s32.totalorder %s2229_s28, %s1960_s30  ;;  %p1966_p9 = scmp.lt.u32.totalorder %s2229_s28, %s2603_s1 }
  0x39   : > { %p1967_p1 = scmp.lt.u32.totalorder %s1965_s29, %s1960_s30  ;;  %p1969_p4 = scmp.lt.u32.totalorder %s1960_s30, %s2229_s28 }
  0x3a   : > { %p1963_p5 = pnand %p1962_p3, %p1961_p0 }
  0x3b   : > { %p1968_p2 = por %p1967_p1, %p1966_p9 }
  0x3c   : > { %p1964_p7 = pneg %p1963_p5 }
  0x3d   : > { %p1970_p6 = por %p1969_p4, %p1968_p2 }
  0x3f   : > { %p1971_p8 = pnand %p1970_p6, %p1964_p7 }
  0x41   : > { %1974 = shalt.err (!%p1971_p8)
}
  0x42   : > { %s1975_s8 = scalar_lea.vmem %s2231_s12, 1536  ;;  %s2081_s9 = smov [#allocation3]  }
  0x43   : > { %p1976_p12 = scmp.ne.s32.totalorder %s2231_s12, %s1975_s8  ;;  %s1980_s11 = sshll.u32 %s2081_s9, 4  ;;  %s1981_s11 = int_to_ptr.vmem [resolvable:$false] %s1980_s11 }
  0x44   : > { %s1982_s22 = scalar_lea.vmem %s1981_s11, 3072  ;;  %p1983_p5 = scmp.lt.s32.totalorder %s2231_s12, %s1981_s11 }
  0x45   : > { %p1978_p13 = pnand %p1976_p12, %p1962_p3  ;;  %p1984_p9 = scmp.lt.s32.totalorder %s1982_s22, %s1975_s8 }
  0x47   : > { %p1979_p0 = pneg %p1978_p13  ;;  %p1985_p1 = por %p1984_p9, %p1983_p5 }
  0x49   : > { %p1986_p2 = pnand %p1985_p1, %p1979_p0 }
  0x4b   : > { %1989 = shalt.err (!%p1986_p2)
}
  0x4c   : > { %1823 = dma.hbm_to_vmem [thread:$0]  (!%p2222_p11), %s2229_s28, 1536, %s2231_s12, %s2233_s6, %s2079_s14, %s2079_s14, %s2080_s21  }
  0x4d   : > { %p2620_p3 = scmp.ne.s32.totalorder %s2615_s27, 0 }
  0x4e   : > { %s2267_s30 = sand.u32 (!%p2620_p3), 1, %s2060_s16   ;;  %p2621_p7 = scmp.ne.s32.totalorder (!%p2620_p3), %s2613_s25, 0 }
  0x4f   : > { %224 = sbr.rel (%p2620_p3) target bundleno = 1214 (0x4be), region = 36  ;;  %s227_s24 = scalar_lea.sflag (!%p2620_p3), [#allocation4], %s2267_s30 }
  0x50   : > { %s1807_s29 = smul.u32 (!%p2620_p3), 96, %s2267_s30 }
  0x52   : > { %s2271_s8 = scalar_lea.vmem (!%p2620_p3), [#allocation3], %s1807_s29 }
  0x56   : > { %2043 = dma.done.wait (%p2621_p7), %s227_s24, 1536  }
  0x57   : > { %2045 = vsyncadd (%p2621_p7), %s227_s24, 4294965760  ;;  %p2622_p11 = scmp.ne.s32.totalorder %s2611_s23, 0 }
  0x59   : > { %2047 = dma.done.wait (%p2622_p11), [#allocation7], 6144  }
  0x5a   : > { %2049 = vsyncadd (%p2622_p11), [#allocation7], 4294961152  ;;  %s1339_s27 = sshll.u32 %s2267_s30, 5  ;;  %p1340_p4 = scmp.ne.s32.totalorder %s2068_s18, 0 }
  0x5b   : > { %s2282_s14 = scalar_lea.vmem [#allocation8], %s1339_s27  ;;  %v2082_v0 = vmov (!%p1340_p4), 0.0  }
  0x5c   : > { %272 = sbr.rel (%p1340_p4) target bundleno = 99 (0x63), region = 48  ;;  %273 = vst [vmem:[#allocation2] sm:$0xff] (!%p1340_p4), %v2082_v0 }
  0x63 PF: > { %v282_v1 = vld [vmem:[#allocation6 + $0x8] sm:$0xff]  ;;  %v285_v2 = vld [vmem:[#allocation6 + $0x20] sm:$0xff]  ;;  %v284_v5 = vld [vmem:[#allocation6 + $0x18] sm:$0xff]  ;;  %v2083_v8 = vmov 0.0|0.0   ;;  %v2084_v9 = vmov 0.0   ;;  %vm2085_vm0 = vmmov 0  }
  0x64   : > { %v281_v3 = vld [vmem:[#allocation6] sm:$0xff]  ;;  %v2285_v4 = vpack.c.bf16 %v285_v2, %v282_v1  ;;  %v288_v6 = vld [vmem:[#allocation6 + $0x38] sm:$0xff]  ;;  %v291_v7 = vld [vmem:[#allocation6 + $0x50] sm:$0xff]  ;;  %1613 = vmatprep.subr.bf16.mxu1 %v2083_v8  ;;  %393 = vmatprep.mubr.f32.mxu0 %v2084_v9  ;;  %v2086_v15 = vmov 0   ;;  %s2311_s23 = sshll.u32 %s2068_s18, 2  ;;  %s1372_s11 = sshll.u32 %s2068_s18, 9 }
  0x65   : > { %v2289_v10 = vpack.c.bf16 %v284_v5, %v281_v3  ;;  %v2291_v11 = vpack.c.bf16 %v291_v7, %v288_v6  ;;  %v287_v12 = vld [vmem:[#allocation6 + $0x30] sm:$0xff]  ;;  %v290_v13 = vld [vmem:[#allocation6 + $0x48] sm:$0xff]  ;;  %1473 = vmatprep.mubr.msk.f32.mxu1 %vm2085_vm0, %v2084_v9  ;;  %1890 = vset.pattern.permute.xlu0 %v2086_v15  ;;  %v297_v16 = vld [vmem:[#allocation6 + $0x80] sm:$0xff]  ;;  %s725_s25 = sadd.s32 1, %s2311_s23  ;;  %v497_v43 = vstv %s2311_s23  ;;  %s955_s6 = sadd.s32 2, %s2311_s23 }
  0x66   : > { %v294_v14 = vld [vmem:[#allocation6 + $0x68] sm:$0xff]  ;;  %1582 = vmatprep.subr.bf16.mxu0 %v2285_v4  ;;  %1891 = vset.pattern.permute.xlu1 %v2086_v15  ;;  %v2297_v17 = vpack.c.bf16 %v290_v13, %v287_v12  ;;  %v293_v19 = vld [vmem:[#allocation6 + $0x60] sm:$0xff]  ;;  %v296_v20 = vld [vmem:[#allocation6 + $0x78] sm:$0xff]  ;;  %v726_v44 = vstv %s725_s25  ;;  %s1185_s9 = sadd.s32 3, %s2311_s23  ;;  %s1217_s22 = sshll.u32 %s2282_s14, 4  ;;  %s2550_s22 = int_to_ptr.vmem [resolvable:$true] %s1217_s22 }
  0x67   : > { %1584 = vmatpush1.bf16.msra.mxu0 %v2289_v10  ;;  %v2300_v18 = vpack.c.bf16 %v297_v16, %v294_v14  ;;  %v300_v21 = vld [vmem:[#allocation6 + $0x98] sm:$0xff]  ;;  %v303_v22 = vld [vmem:[#allocation6 + $0xb0] sm:$0xff]  ;;  %v2303_v23 = vpack.c.bf16 %v296_v20, %v293_v19  ;;  %v302_v26 = vld [vmem:[#allocation6 + $0xa8] sm:$0xff]  ;;  %s1203_s27 = scalar_lea.sflag [#allocation5], %s2267_s30  ;;  %s1990_s18 = scalar_lea.vmem %s2550_s22, 512 }
  0x68   : > { %1586 = vmatprep.subr.bf16.mxu0 %v2291_v11  ;;  %v299_v24 = vld [vmem:[#allocation6 + $0x90] sm:$0xff]  ;;  %v2306_v25 = vpack.c.bf16 %v303_v22, %v300_v21  ;;  %v286_v28 = vld [vmem:[#allocation6 + $0x28] sm:$0xff]  ;;  %v309_v30 = vld [vmem:[#allocation6 + $0xe0] sm:$0xff]  ;;  %p1991_p6 = scmp.ne.s32.totalorder %s2550_s22, %s1990_s18  ;;  %s2087_s23 = smov [#allocation8]  }
  0x69   : > { %v283_v27 = vld [vmem:[#allocation6 + $0x10] sm:$0xff]  ;;  %v306_v29 = vld [vmem:[#allocation6 + $0xc8] sm:$0xff]  ;;  %v289_v32 = vld [vmem:[#allocation6 + $0x40] sm:$0xff]  ;;  %v2315_v34 = vpack.c.bf16 %v302_v26, %v299_v24  ;;  %s1994_s25 = sshll.u32 %s2087_s23, 4  ;;  %s1995_s25 = int_to_ptr.vmem [resolvable:$false] %s1994_s25 }
  0x6a   : > { %v2308_v31 = vpack.c.bf16 %v286_v28, %v283_v27  ;;  %v292_v33 = vld [vmem:[#allocation6 + $0x58] sm:$0xff]  ;;  %v305_v35 = vld [vmem:[#allocation6 + $0xc0] sm:$0xff]  ;;  %v2321_v37 = vpack.c.bf16 %v309_v30, %v306_v29  ;;  %v295_v39 = vld [vmem:[#allocation6 + $0x70] sm:$0xff]  ;;  %p1992_p8 = pnand %p1991_p6, %p2210_p10  ;;  %s1996_s21 = scalar_lea.vmem %s1995_s25, 1024 }
  0x6b   : > { %1588 = vmatpush1.bf16.msra.mxu0 %v2297_v17  ;;  %v2318_v36 = vpack.c.bf16 %v292_v33, %v289_v32  ;;  %v308_v38 = vld [vmem:[#allocation6 + $0xd8] sm:$0xff]  ;;  %v298_v40 = vld [vmem:[#allocation6 + $0x88] sm:$0xff]  ;;  %v315_v42 = vld [vmem:[#allocation6 + $0x110] sm:$0xff]  ;;  %p1997_p13 = scmp.lt.s32.totalorder %s2550_s22, %s1995_s25  ;;  %p1998_p0 = scmp.lt.s32.totalorder %s1996_s21, %s1990_s18 }
  0x6c   : > { %1590 = vmatprep.subr.bf16.mxu0 %v2300_v18  ;;  %1615 = vmatpush3.bf16.msra.mxu1 %v2308_v31  ;;  %v312_v41 = vld [vmem:[#allocation6 + $0xf8] sm:$0xff]  ;;  %v2326_v45 = vpack.c.bf16 %v308_v38, %v305_v35  ;;  %v311_v46 = vld [vmem:[#allocation6 + $0xf0] sm:$0xff]  ;;  %v2329_v47 = vpack.c.bf16 %v298_v40, %v295_v39  ;;  %v2334_v48 = vld [vmem:[%s2602_s0] sm:$0xff]  ;;  %p1993_p12 = pneg %p1992_p8 }
  0x6d   : > { %1616 = vmatprep.subr.bf16.mxu1 %v2083_v8  ;;  %v2337_v49 = vpack.c.bf16 %v315_v42, %v312_v41  ;;  %v314_v50 = vld [vmem:[#allocation6 + $0x108] sm:$0xff]  ;;  %v301_v51 = vld [vmem:[#allocation6 + $0xa0] sm:$0xff]  ;;  %v304_v52 = vld [vmem:[#allocation6 + $0xb8] sm:$0xff]  ;;  %vm498_vm1 = vcmp.lt.s32.totalorder %v497_v43, %v2334_v48  ;;  %vm727_vm2 = vcmp.lt.s32.totalorder %v726_v44, %v2334_v48  ;;  %p1999_p5 = por %p1998_p0, %p1997_p13 }
  0x6e   : > { %v318_v53 = vld [vmem:[#allocation6 + $0x128] sm:$0xff]  ;;  %v321_v54 = vld [vmem:[#allocation6 + $0x140] sm:$0xff]  ;;  %v1345_v55 = vsel %vm498_vm1, 1.0, %v2084_v9  ;;  %v2344_v56 = vpack.c.bf16 %v314_v50, %v311_v46  ;;  %v2347_v58 = vpack.c.bf16 %v304_v52, %v301_v51  ;;  %v1351_v59 = vsel %vm727_vm2, 1.0, %v2084_v9  ;;  %v320_v61 = vld [vmem:[#allocation6 + $0x138] sm:$0xff] }
  0x6f   : > { %1592 = vmatpush1.bf16.msra.mxu0 %v2303_v23  ;;  %503 = vperm.xlu0 %1890, %v1345_v55   ;;  %v317_v57 = vld [vmem:[#allocation6 + $0x120] sm:$0xff]  ;;  %v2351_v60 = vpack.c.bf16 %v321_v54, %v318_v53  ;;  %v307_v62 = vld [vmem:[#allocation6 + $0xd0] sm:$0xff]  ;;  %v310_v63 = vld [vmem:[#allocation6 + $0xe8] sm:$0xff]  ;;  %p2000_p9 = pnand %p1999_p5, %p1993_p12 }
  0x70   : > { %1594 = vmatprep.subr.bf16.mxu0 %v2306_v25  ;;  %1618 = vmatpush3.bf16.msra.mxu1 %v2318_v36  ;;  %v324_v0 = vld [vmem:[#allocation6 + $0x158] sm:$0xff]  ;;  %v327_v1 = vld [vmem:[#allocation6 + $0x170] sm:$0xff]  ;;  %v2355_v2 = vpack.c.bf16 %v320_v61, %v317_v57  ;;  %v2358_v5 = vpack.c.bf16 %v310_v63, %v307_v62  ;;  %v326_v7 = vld [vmem:[#allocation6 + $0x168] sm:$0xff] }
  0x71   : > { %1619 = vmatprep.subr.bf16.mxu1 %v2083_v8  ;;  %v323_v3 = vld [vmem:[#allocation6 + $0x150] sm:$0xff]  ;;  %v2361_v6 = vpack.c.bf16 %v327_v1, %v324_v0  ;;  %v313_v12 = vld [vmem:[#allocation6 + $0x100] sm:$0xff]  ;;  %v316_v13 = vld [vmem:[#allocation6 + $0x118] sm:$0xff] }
  0x72   : > { %v2365_v14 = vpack.c.bf16 %v326_v7, %v323_v3  ;;  %v2368_v15 = vpack.c.bf16 %v316_v13, %v313_v12  ;;  %v319_v16 = vld [vmem:[#allocation6 + $0x130] sm:$0xff]  ;;  %v322_v19 = vld [vmem:[#allocation6 + $0x148] sm:$0xff]  ;;  %v2373_v20 = vld [vmem:[#allocation2] sm:$0xff]  ;;  %v956_v12 = vstv %s955_s6  ;;  %v1186_v13 = vstv %s1185_s9 }
  0x73   : > { %1596 = vmatpush1.bf16.msra.mxu0 %v2315_v34  ;;  %732 = vperm.xlu0 %1890, %v1351_v59   ;;  %v2376_v21 = vpack.c.bf16 %v322_v19, %v319_v16  ;;  %v325_v22 = vld [vmem:[#allocation6 + $0x160] sm:$0xff]  ;;  %v328_v24 = vld [vmem:[#allocation6 + $0x178] sm:$0xff]  ;;  %v279_v33 = vld [vmem:[%s2271_s8 + $0x8] sm:$0xff]  ;;  %vm957_vm3 = vcmp.lt.s32.totalorder %v956_v12, %v2334_v48  ;;  %vm1187_vm4 = vcmp.lt.s32.totalorder %v1186_v13, %v2334_v48 }
  0x74   : > { %1598 = vmatprep.subr.bf16.mxu0 %v2321_v37  ;;  %1621 = vmatpush3.bf16.msra.mxu1 %v2329_v47  ;;  %v2382_v26 = vpack.c.bf16 %v328_v24, %v325_v22  ;;  %v278_v27 = vld [vmem:[%s2271_s8] sm:$0xff]  ;;  %v2428_v43 = vld [vmem:[%s2605_s3] ss:$0 sm:$0xff]  ;;  %v280_v51 = vld [vmem:[%s2271_s8 + $0x10] sm:$0xff]  ;;  %v1358_v16 = vsel %vm957_vm3, 1.0, %v2084_v9  ;;  %v1365_v19 = vsel %vm1187_vm4, 1.0, %v2084_v9 }
  0x75   : > { %1622 = vmatprep.subr.bf16.mxu1 %v2083_v8  ;;  %962 = vperm.xlu1 %1891, %v1358_v16  }
  0x77   : > { %1600 = vmatpush1.bf16.msra.mxu0 %v2326_v45 }
  0x78   : > { %1602 = vmatprep.subr.bf16.mxu0 %v2337_v49  ;;  %1624 = vmatpush3.bf16.msra.mxu1 %v2347_v58 }
  0x79   : > { %1625 = vmatprep.subr.bf16.mxu1 %v2083_v8  ;;  %1192 = vperm.xlu1 %1891, %v1365_v19  }
  0x7b   : > { %1604 = vmatpush1.bf16.msra.mxu0 %v2344_v56 }
  0x7c   : > { %1606 = vmatprep.subr.bf16.mxu0 %v2351_v60  ;;  %1627 = vmatpush3.bf16.msra.mxu1 %v2358_v5 }
  0x7d   : > { %1628 = vmatprep.subr.bf16.mxu1 %v2083_v8 }
  0x7f   : > { %1608 = vmatpush1.bf16.msra.mxu0 %v2355_v2 }
  0x80   : > { %1610 = vmatprep.subr.bf16.mxu0 %v2361_v6  ;;  %1630 = vmatpush3.bf16.msra.mxu1 %v2368_v15 }
  0x81   : > { %1631 = vmatprep.subr.bf16.mxu1 %v2083_v8 }
  0x83   : > { %1612 = vmatpush1.bf16.msra.mxu0 %v2365_v14 }
  0x84   : > { %1638 = vmatprep.subr.bf16.mxu0 %v2285_v4  ;;  %1633 = vmatpush3.bf16.msra.mxu1 %v2376_v21 }
  0x85   : > { %1634 = vmatprep.subr.bf16.mxu1 %v2083_v8 }
  0x86   : > { %394 = vmatmul.mubr.f32.vlgmr.msra.gmra.mrb[0].mxu0 %v2373_v20 }
  0x87   : > { %1640 = vmatpush1.bf16.msra.mxu0 %v2289_v10  ;;  %627 = vmatprep.mubr.f32.mxu0 %v2084_v9 }
  0x88   : > { %1642 = vmatprep.subr.bf16.mxu0 %v2291_v11  ;;  %1636 = vmatpush3.bf16.msra.mxu1 %v2382_v26 }
  0x89   : > { %1669 = vmatprep.subr.bf16.mxu1 %v2083_v8 }
  0x8b   : > { %1644 = vmatpush1.bf16.msra.mxu0 %v2297_v17  ;;  %1474 = vmatmul.mubr.f32.vlgmr.msra.gmra.mrb[0].mxu1 %v2373_v20 }
  0x8c   : > { %1646 = vmatprep.subr.bf16.mxu0 %v2300_v18  ;;  %1671 = vmatpush3.bf16.msra.mxu1 %v2308_v31 }
  0x8d   : > { %1672 = vmatprep.subr.bf16.mxu1 %v2083_v8  ;;  %1508 = vmatprep.mubr.msk.f32.mxu1 %vm2085_vm0, %v2084_v9 }
  0x8f   : > { %1648 = vmatpush1.bf16.msra.mxu0 %v2303_v23 }
  0x90   : > { %1650 = vmatprep.subr.bf16.mxu0 %v2306_v25  ;;  %1674 = vmatpush3.bf16.msra.mxu1 %v2318_v36 }
  0x91   : > { %1675 = vmatprep.subr.bf16.mxu1 %v2083_v8 }
  0x93   : > { %1652 = vmatpush1.bf16.msra.mxu0 %v2315_v34 }
  0x94   : > { %1654 = vmatprep.subr.bf16.mxu0 %v2321_v37  ;;  %1677 = vmatpush3.bf16.msra.mxu1 %v2329_v47 }
  0x95   : > { %1678 = vmatprep.subr.bf16.mxu1 %v2083_v8 }
  0x97   : > { %1656 = vmatpush1.bf16.msra.mxu0 %v2326_v45 }
  0x98   : > { %1658 = vmatprep.subr.bf16.mxu0 %v2337_v49  ;;  %1680 = vmatpush3.bf16.msra.mxu1 %v2347_v58 }
  0x99   : > { %1681 = vmatprep.subr.bf16.mxu1 %v2083_v8 }
  0x9b   : > { %1660 = vmatpush1.bf16.msra.mxu0 %v2344_v56 }
  0x9c   : > { %1662 = vmatprep.subr.bf16.mxu0 %v2351_v60  ;;  %1683 = vmatpush3.bf16.msra.mxu1 %v2358_v5 }
  0x9d   : > { %1684 = vmatprep.subr.bf16.mxu1 %v2083_v8 }
  0x9f   : > { %1664 = vmatpush1.bf16.msra.mxu0 %v2355_v2 }
  0xa0   : > { %1666 = vmatprep.subr.bf16.mxu0 %v2361_v6  ;;  %1686 = vmatpush3.bf16.msra.mxu1 %v2368_v15 }
  0xa1   : > { %1687 = vmatprep.subr.bf16.mxu1 %v2083_v8 }
  0xa3   : > { %1668 = vmatpush1.bf16.msra.mxu0 %v2365_v14 }
  0xa4   : > { %1694 = vmatprep.subr.bf16.mxu0 %v2285_v4  ;;  %1689 = vmatpush3.bf16.msra.mxu1 %v2376_v21 }
  0xa5   : > { %1690 = vmatprep.subr.bf16.mxu1 %v2083_v8 }
  0xa8   : > { %1692 = vmatpush3.bf16.msra.mxu1 %v2382_v26 }
  0xa9   : > { %1725 = vmatprep.subr.bf16.mxu1 %v2083_v8 }
  0xee   : > { %v504_v63 = vpop.permute.xlu0 %503 }
 0x159   : > { %v395_v28 = vpop.f32.mrb[0].mxu0 }
 0x15a   : > { %v470_v29 = vadd.f32 %v395_v28, %v278_v27  ;;  %v397_v30 = vpop.f32.mrb[1].mxu0 }
 0x15b   : > { %v477_v38 = vadd.f32 %v397_v30, %v279_v33  ;;  %v1347_v30 = vld [vmem:[%s2271_s8 + $0x20] sm:$0xff] }
 0x15c   : > { %v1342_v32 = vmul.f32 -1.442695, %v470_v29 }
 0x15d   : > { %v1343_v40 = vmul.f32 -1.442695, %v477_v38 }
 0x15e   : > { %1892 = vpow2.f32 %v1342_v32  ;;  %v466_v35 = vpop.f32.mrb[0].mxu1 }
 0x15f   : > { %v1475_v39 = vpop.f32.mrb[1].mxu1  ;;  %1894 = vpow2.f32 %v1343_v40  ;;  %v490_v44 = vadd.f32 %v2428_v43, %v466_v35 }
 0x168   : > { %v1893_v41 = vpop.eup %1892 }
 0x169   : > { %v474_v42 = vadd.f32 1.0, %v1893_v41  ;;  %v1895_v46 = vpop.eup %1894  ;;  %v1348_v41 = vld [vmem:[%s2271_s8 + $0x28] sm:$0xff] }
 0x16a   : > { %v481_v53 = vadd.f32 1.0, %v1895_v46 }
 0x16b   : > { %1896 = vrcp.f32 %v474_v42 }
 0x175   : > { %v1897_v50 = vpop.eup %1896 }
 0x176   : > { %v491_v52 = vmul.f32 %v1897_v50, %v490_v44 }
 0x178   : > { %v492_v54 = vadd.f32 %v491_v52, %v280_v51 }
 0x17a   : > { %1898 = vtanh.f32 %v492_v54 }
 0x17b   : > { %1900 = vrcp.f32 %v481_v53 }
 0x184   : > { %v1899_v55 = vpop.eup %1898 }
 0x185   : > { %v494_v57 = vsub.f32 %v2373_v20, %v1899_v55  ;;  %v1901_v59 = vpop.eup %1900 }
 0x187   : > { %v495_v61 = vmul.f32 %v1901_v59, %v494_v57 }
 0x189   : > { %v496_v62 = vadd.f32 %v1899_v55, %v495_v61  ;;  %v733_v55 = vpop.permute.xlu0 %732 }
 0x18b   : > { %v508_v0 = vsub.f32 %v496_v62, %v2373_v20  ;;  %v506_v1 = vmul.f32 %v504_v63, %v496_v62 }
 0x18d   : > { %507 = vst [vmem:[%s2282_s14] sm:$0xff] %v506_v1  ;;  %v509_v3 = vmul.f32 %v508_v0, %v504_v63 }
 0x18f   : > { %v2436_v7 = vadd.f32 %v509_v3, %v2373_v20  ;;  %v1346_v20 = vld [vmem:[%s2271_s8 + $0x18] sm:$0xff] }
 0x191   : > { %628 = vmatmul.mubr.f32.vlgmr.msra.gmra.mrb[2].mxu0 %v2436_v7  ;;  %1509 = vmatmul.mubr.f32.vlgmr.msra.gmra.mrb[2].mxu1 %v2436_v7 }
 0x192   : > { %1696 = vmatpush1.bf16.msra.mxu0 %v2289_v10  ;;  %1727 = vmatpush3.bf16.msra.mxu1 %v2308_v31 }
 0x193   : > { %1698 = vmatprep.subr.bf16.mxu0 %v2291_v11  ;;  %1728 = vmatprep.subr.bf16.mxu1 %v2083_v8 }
 0x194   : > { %857 = vmatprep.mubr.f32.mxu0 %v2084_v9  ;;  %1543 = vmatprep.mubr.msk.f32.mxu1 %vm2085_vm0, %v2084_v9 }
 0x196   : > { %1700 = vmatpush1.bf16.msra.mxu0 %v2297_v17  ;;  %1730 = vmatpush3.bf16.msra.mxu1 %v2318_v36 }
 0x197   : > { %1702 = vmatprep.subr.bf16.mxu0 %v2300_v18  ;;  %1731 = vmatprep.subr.bf16.mxu1 %v2083_v8 }
 0x19a   : > { %1704 = vmatpush1.bf16.msra.mxu0 %v2303_v23  ;;  %1733 = vmatpush3.bf16.msra.mxu1 %v2329_v47 }
 0x19b   : > { %1706 = vmatprep.subr.bf16.mxu0 %v2306_v25  ;;  %1734 = vmatprep.subr.bf16.mxu1 %v2083_v8 }
 0x19e   : > { %1708 = vmatpush1.bf16.msra.mxu0 %v2315_v34  ;;  %1736 = vmatpush3.bf16.msra.mxu1 %v2347_v58 }
 0x19f   : > { %1710 = vmatprep.subr.bf16.mxu0 %v2321_v37  ;;  %1737 = vmatprep.subr.bf16.mxu1 %v2083_v8 }
 0x1a2   : > { %1712 = vmatpush1.bf16.msra.mxu0 %v2326_v45  ;;  %1739 = vmatpush3.bf16.msra.mxu1 %v2358_v5 }
 0x1a3   : > { %1714 = vmatprep.subr.bf16.mxu0 %v2337_v49  ;;  %1740 = vmatprep.subr.bf16.mxu1 %v2083_v8 }
 0x1a6   : > { %1716 = vmatpush1.bf16.msra.mxu0 %v2344_v56  ;;  %1742 = vmatpush3.bf16.msra.mxu1 %v2368_v15 }
 0x1a7   : > { %1718 = vmatprep.subr.bf16.mxu0 %v2351_v60  ;;  %1743 = vmatprep.subr.bf16.mxu1 %v2083_v8 }
 0x1aa   : > { %1720 = vmatpush1.bf16.msra.mxu0 %v2355_v2  ;;  %1745 = vmatpush3.bf16.msra.mxu1 %v2376_v21 }
 0x1ab   : > { %1722 = vmatprep.subr.bf16.mxu0 %v2361_v6  ;;  %1746 = vmatprep.subr.bf16.mxu1 %v2083_v8 }
 0x1ae   : > { %1724 = vmatpush1.bf16.msra.mxu0 %v2365_v14  ;;  %1748 = vmatpush3.bf16.msra.mxu1 %v2382_v26 }
 0x1af   : > { %1750 = vmatprep.subr.bf16.mxu0 %v2285_v4  ;;  %1781 = vmatprep.subr.bf16.mxu1 %v2083_v8 }
 0x264   : > { %v629_v22 = vpop.f32.mrb[2].mxu0  ;;  %v700_v4 = vpop.f32.mrb[2].mxu1 }
 0x265   : > { %v704_v24 = vadd.f32 %v1346_v20, %v629_v22  ;;  %v631_v27 = vpop.f32.mrb[3].mxu0  ;;  %v1510_v28 = vpop.f32.mrb[3].mxu1  ;;  %v718_v39 = vadd.f32 %v2428_v43, %v700_v4  ;;  %v1361_v4 = vld [vmem:[%s2271_s8 + $0x50] sm:$0xff] }
 0x266   : > { %v711_v32 = vadd.f32 %v1347_v30, %v631_v27 }
 0x267   : > { %v1349_v29 = vmul.f32 -1.442695, %v704_v24 }
 0x268   : > { %v1350_v33 = vmul.f32 -1.442695, %v711_v32 }
 0x269   : > { %1902 = vpow2.f32 %v1349_v29 }
 0x26a   : > { %1904 = vpow2.f32 %v1350_v33 }
 0x273   : > { %v1903_v35 = vpop.eup %1902 }
 0x274   : > { %v708_v48 = vadd.f32 1.0, %v1903_v35  ;;  %v1905_v38 = vpop.eup %1904  ;;  %v1362_v35 = vld [vmem:[%s2271_s8 + $0x58] sm:$0xff] }
 0x275   : > { %v715_v46 = vadd.f32 1.0, %v1905_v38 }
 0x276   : > { %1906 = vrcp.f32 %v708_v48 }
 0x280   : > { %v1907_v40 = vpop.eup %1906 }
 0x281   : > { %v719_v42 = vmul.f32 %v1907_v40, %v718_v39 }
 0x283   : > { %v720_v44 = vadd.f32 %v1348_v41, %v719_v42 }
 0x285   : > { %1908 = vtanh.f32 %v720_v44 }
 0x286   : > { %1910 = vrcp.f32 %v715_v46 }
 0x28f   : > { %v1909_v50 = vpop.eup %1908 }
 0x290   : > { %v722_v51 = vsub.f32 %v2436_v7, %v1909_v50  ;;  %v1911_v52 = vpop.eup %1910 }
 0x292   : > { %v723_v53 = vmul.f32 %v1911_v52, %v722_v51 }
 0x294   : > { %v724_v54 = vadd.f32 %v1909_v50, %v723_v53 }
 0x296   : > { %v735_v57 = vmul.f32 %v733_v55, %v724_v54  ;;  %v738_v59 = vsub.f32 %v724_v54, %v2436_v7 }
 0x298   : > { %1352 = vst [vmem:[%s2282_s14 + $0x8] sm:$0xff] %v735_v57  ;;  %v739_v61 = vmul.f32 %v738_v59, %v733_v55 }
 0x29a   : > { %v2489_v62 = vadd.f32 %v739_v61, %v2436_v7  ;;  %v1360_v7 = vld [vmem:[%s2271_s8 + $0x48] sm:$0xff] }
 0x29c   : > { %858 = vmatmul.mubr.f32.vlgmr.msra.gmra.mrb[4].mxu0 %v2489_v62  ;;  %1544 = vmatmul.mubr.f32.vlgmr.msra.gmra.mrb[4].mxu1 %v2489_v62 }
 0x29d   : > { %1752 = vmatpush1.bf16.msra.mxu0 %v2289_v10  ;;  %1783 = vmatpush3.bf16.msra.mxu1 %v2308_v31  ;;  %v1354_v31 = vld [vmem:[%s2271_s8 + $0x38] sm:$0xff] }
 0x29e   : > { %1754 = vmatprep.subr.bf16.mxu0 %v2291_v11  ;;  %1784 = vmatprep.subr.bf16.mxu1 %v2083_v8 }
 0x29f   : > { %1087 = vmatprep.mubr.f32.mxu0 %v2084_v9  ;;  %1578 = vmatprep.mubr.msk.f32.mxu1 %vm2085_vm0, %v2084_v9  ;;  %v1353_v9 = vld [vmem:[%s2271_s8 + $0x30] sm:$0xff] }
 0x2a1   : > { %1756 = vmatpush1.bf16.msra.mxu0 %v2297_v17  ;;  %1786 = vmatpush3.bf16.msra.mxu1 %v2318_v36 }
 0x2a2   : > { %1758 = vmatprep.subr.bf16.mxu0 %v2300_v18  ;;  %1787 = vmatprep.subr.bf16.mxu1 %v2083_v8 }
 0x2a5   : > { %1760 = vmatpush1.bf16.msra.mxu0 %v2303_v23  ;;  %1789 = vmatpush3.bf16.msra.mxu1 %v2329_v47 }
 0x2a6   : > { %1762 = vmatprep.subr.bf16.mxu0 %v2306_v25  ;;  %1790 = vmatprep.subr.bf16.mxu1 %v2083_v8 }
 0x2a9   : > { %1764 = vmatpush1.bf16.msra.mxu0 %v2315_v34  ;;  %1792 = vmatpush3.bf16.msra.mxu1 %v2347_v58 }
 0x2aa   : > { %1766 = vmatprep.subr.bf16.mxu0 %v2321_v37  ;;  %1793 = vmatprep.subr.bf16.mxu1 %v2083_v8 }
 0x2ad   : > { %1768 = vmatpush1.bf16.msra.mxu0 %v2326_v45  ;;  %1795 = vmatpush3.bf16.msra.mxu1 %v2358_v5 }
 0x2ae   : > { %1770 = vmatprep.subr.bf16.mxu0 %v2337_v49  ;;  %1796 = vmatprep.subr.bf16.mxu1 %v2083_v8 }
 0x2b1   : > { %1772 = vmatpush1.bf16.msra.mxu0 %v2344_v56  ;;  %1798 = vmatpush3.bf16.msra.mxu1 %v2368_v15  ;;  %v1355_v56 = vld [vmem:[%s2271_s8 + $0x40] sm:$0xff]  ;;  %s2548_s8 = scalar_lea.hbm %s2606_s4, %s1372_s11 }
 0x2b2   : > { %1774 = vmatprep.subr.bf16.mxu0 %v2351_v60  ;;  %1799 = vmatprep.subr.bf16.mxu1 %v2083_v8 }
 0x2b5   : > { %1776 = vmatpush1.bf16.msra.mxu0 %v2355_v2  ;;  %1801 = vmatpush3.bf16.msra.mxu1 %v2376_v21 }
 0x2b6   : > { %1778 = vmatprep.subr.bf16.mxu0 %v2361_v6  ;;  %1802 = vmatprep.subr.bf16.mxu1 %v2083_v8 }
 0x2b9   : > { %1780 = vmatpush1.bf16.msra.mxu0 %v2365_v14  ;;  %1804 = vmatpush3.bf16.msra.mxu1 %v2382_v26  ;;  %v963_v26 = vpop.permute.xlu1 %962 }
 0x2bd   : > { %v1193_v50 = vpop.permute.xlu1 %1192 }
 0x36f   : > { %v859_v10 = vpop.f32.mrb[4].mxu0  ;;  %v930_v11 = vpop.f32.mrb[4].mxu1 }
 0x370   : > { %v934_v17 = vadd.f32 %v1353_v9, %v859_v10  ;;  %v861_v18 = vpop.f32.mrb[5].mxu0  ;;  %v1545_v23 = vpop.f32.mrb[5].mxu1  ;;  %v948_v47 = vadd.f32 %v2428_v43, %v930_v11 }
 0x371   : > { %v941_v34 = vadd.f32 %v1354_v31, %v861_v18 }
 0x372   : > { %v1356_v25 = vmul.f32 -1.442695, %v934_v17 }
 0x373   : > { %v1357_v36 = vmul.f32 -1.442695, %v941_v34 }
 0x374   : > { %1912 = vpow2.f32 %v1356_v25 }
 0x375   : > { %1914 = vpow2.f32 %v1357_v36 }
 0x37e   : > { %v1913_v37 = vpop.eup %1912 }
 0x37f   : > { %v938_v45 = vadd.f32 1.0, %v1913_v37  ;;  %v1915_v8 = vpop.eup %1914 }
 0x380   : > { %v945_v2 = vadd.f32 1.0, %v1915_v8 }
 0x381   : > { %1916 = vrcp.f32 %v938_v45 }
 0x38b   : > { %v1917_v49 = vpop.eup %1916 }
 0x38c   : > { %v949_v58 = vmul.f32 %v1917_v49, %v948_v47 }
 0x38e   : > { %v950_v60 = vadd.f32 %v1355_v56, %v949_v58 }
 0x390   : > { %1918 = vtanh.f32 %v950_v60 }
 0x391   : > { %1920 = vrcp.f32 %v945_v2 }
 0x39a   : > { %v1919_v5 = vpop.eup %1918 }
 0x39b   : > { %v952_v6 = vsub.f32 %v2489_v62, %v1919_v5  ;;  %v1921_v14 = vpop.eup %1920 }
 0x39d   : > { %v953_v15 = vmul.f32 %v1921_v14, %v952_v6 }
 0x39f   : > { %v954_v21 = vadd.f32 %v1919_v5, %v953_v15 }
 0x3a1   : > { %v965_v63 = vmul.f32 %v963_v26, %v954_v21  ;;  %v968_v0 = vsub.f32 %v954_v21, %v2489_v62 }
 0x3a3   : > { %1359 = vst [vmem:[%s2282_s14 + $0x10] sm:$0xff] %v965_v63  ;;  %v969_v1 = vmul.f32 %v968_v0, %v963_v26 }
 0x3a5   : > { %v2534_v3 = vadd.f32 %v969_v1, %v2489_v62 }
 0x3a7   : > { %1088 = vmatmul.mubr.f32.vlgmr.msra.gmra.mrb[6].mxu0 %v2534_v3  ;;  %1579 = vmatmul.mubr.f32.vlgmr.msra.gmra.mrb[6].mxu1 %v2534_v3 }
 0x47a   : > { %v1089_v12 = vpop.f32.mrb[6].mxu0  ;;  %v1160_v13 = vpop.f32.mrb[6].mxu1 }
 0x47b   : > { %v1164_v16 = vadd.f32 %v1360_v7, %v1089_v12  ;;  %v1091_v19 = vpop.f32.mrb[7].mxu0  ;;  %v1580_v20 = vpop.f32.mrb[7].mxu1  ;;  %v1178_v32 = vadd.f32 %v2428_v43, %v1160_v13 }
 0x47c   : > { %v1171_v24 = vadd.f32 %v1361_v4, %v1091_v19 }
 0x47d   : > { %v1363_v22 = vmul.f32 -1.442695, %v1164_v16 }
 0x47e   : > { %v1364_v27 = vmul.f32 -1.442695, %v1171_v24 }
 0x47f   : > { %1922 = vpow2.f32 %v1363_v22 }
 0x480   : > { %1924 = vpow2.f32 %v1364_v27 }
 0x489   : > { %v1923_v28 = vpop.eup %1922 }
 0x48a   : > { %v1168_v29 = vadd.f32 1.0, %v1923_v28  ;;  %v1925_v30 = vpop.eup %1924 }
 0x48b   : > { %v1175_v39 = vadd.f32 1.0, %v1925_v30 }
 0x48c   : > { %1926 = vrcp.f32 %v1168_v29 }
 0x496   : > { %v1927_v33 = vpop.eup %1926 }
 0x497   : > { %v1179_v48 = vmul.f32 %v1927_v33, %v1178_v32 }
 0x499   : > { %v1180_v38 = vadd.f32 %v1362_v35, %v1179_v48 }
 0x49b   : > { %1928 = vtanh.f32 %v1180_v38 }
 0x49c   : > { %1930 = vrcp.f32 %v1175_v39 }
 0x4a5   : > { %v1929_v40 = vpop.eup %1928 }
 0x4a6   : > { %v1182_v41 = vsub.f32 %v2534_v3, %v1929_v40  ;;  %v1931_v42 = vpop.eup %1930 }
 0x4a8   : > { %v1183_v44 = vmul.f32 %v1931_v42, %v1182_v41 }
 0x4aa   : > { %v1184_v46 = vadd.f32 %v1929_v40, %v1183_v44 }
 0x4ac   : > { %v1195_v43 = vmul.f32 %v1193_v50, %v1184_v46  ;;  %v1198_v51 = vsub.f32 %v1184_v46, %v2534_v3 }
 0x4ae   : > { %v1199_v52 = vmul.f32 %v1198_v51, %v1193_v50  ;;  %1366 = vst [vmem:[%s2282_s14 + $0x18] sm:$0xff] %v1195_v43 }
 0x4af   : > { %2003 = shalt.err (!%p2000_p9)
}
 0x4b0   : > { %s2004_s14 = scalar_lea.hbm %s2548_s8, 512  ;;  %s2008_s28 = scalar_lea.hbm %s2606_s4, 1024 }
 0x4b1   : > { %p2005_p1 = scmp.ne.s32.totalorder %s2548_s8, %s2004_s14  ;;  %p2009_p7 = scmp.lt.u32.totalorder %s2548_s8, %s2606_s4 }
 0x4b2   : > { %p2010_p11 = scmp.lt.u32.totalorder %s2008_s28, %s2004_s14  ;;  %p2012_p6 = scmp.lt.u32.totalorder %s2004_s14, %s2548_s8 }
 0x4b3   : > { %p2006_p2 = pnand %p2005_p1, %p2210_p10 }
 0x4b4   : > { %p2011_p4 = por %p2010_p11, %p2009_p7 }
 0x4b5   : > { %p2007_p3 = pneg %p2006_p2 }
 0x4b6   : > { %p2013_p8 = por %p2012_p6, %p2011_p4 }
 0x4b8   : > { %p2014_p12 = pnand %p2013_p8, %p2007_p3 }
 0x4ba   : > { %2017 = shalt.err (!%p2014_p12)
}
 0x4bb   : > { %s2088_s11 = smov 128   ;;  %s2089_s29 = smov 8   ;;  %v1200_v53 = vadd.f32 %v1199_v52, %v2534_v3 }
 0x4bc   : > { %1814 = dma.vmem_to_hbm [thread:$0]  (%p2210_p10), %s2550_s22, 512, %s2548_s8, %s1203_s27, %s2088_s11, %s2088_s11, %s2089_s29  }
 0x4bd   : > { %1201 = vst [vmem:[#allocation2] sm:$0xff] %v1200_v53 }
 0x4be PF: > { %s1232_s24 = sand.u32 1, %s2056_s15   ;;  %p2623_p13 = scmp.ne.s32.totalorder %s2614_s26, 0 }
 0x4bf   : > { %p2624_p0 = scmp.ge.s32.totalorder %s2076_s20, 2  ;;  %s1233_s18 = scalar_lea.sflag [#allocation5], %s1232_s24 }
 0x4c1   : > { %p1825_p5 = pnand %p2624_p0, %p2623_p13 }
 0x4c3   : > { %2051 = dma.done.wait (!%p1825_p5), %s1233_s18, 512  }
 0x4c4   : > { %2053 = vsyncadd (!%p1825_p5), %s1233_s18, 4294966784  ;;  %s21_s20 = sadd.s32 1, %s2076_s20   ;;  %s2625_s15 = smov %s2060_s16 }
 0x4c5   : > { %p18_p9 = scmp.ge.s32.totalorder %s21_s20, 4   ;;  %s2626_s16 = smov %s2064_s17 }
 0x4c6   : > { %s2627_s17 = smov %s2219_s10  ;;  %s2628_s18 = smov %s2072_s19 }
 0x4c7   : > { %s2629_s19 = smov %s2631_s5  ;;  %20 = sbr.rel (!%p18_p9) target bundleno = 7 (0x7), region = 98 }
 0x4ce   :  { %1238 = vsyncpa [#allocation4], 1 }
 0x4cf   :  { %1240 = vsyncpa [#allocation4 + $0x1], 1 }
 0x4d0   :  { %1241 = vsyncpa [#allocation7], 1 }
 0x4d1   :  { %1242 = vsyncpa [#allocation5], 1 }
 0x4d2   :  { %1244 = vsyncpa [#allocation5 + $0x1], 1 }

</bundles_post_ra>
